<compile_context>
chip_gen: v5e
topology: v5e:2x2
jax: 0.10.0
libtpu: 0.0.40
codegen_flags: <defaults>
</compile_context>

<pallas_src>
import functools

import jax
import jax.numpy as jnp
from jax.experimental import pallas as pl
from jax.experimental.pallas import tpu as pltpu


# ---------------------------------------------------------------------------
# helpers
# ---------------------------------------------------------------------------
def _round_up(x, m):
    return ((x + m - 1) // m) * m


def _largest_tile(dim, cap):
    """Largest multiple of 128 that divides `dim` (dim % 128 == 0) and <= cap."""
    if dim <= 128:
        return dim
    t = max(128, (min(cap, dim) // 128) * 128)
    while dim % t:
        t -= 128
    return t


def _tile_caps():
    """Generation-aware tile caps (tm, tn, tk) and vmem limit."""
    try:
        vmem = pltpu.get_tpu_info().vmem_capacity_bytes
    except Exception:
        vmem = 64 * 1024 * 1024
    if vmem >= 96 * 1024 * 1024:
        # v5e / v6e: 128 MiB VMEM -> lane-dense 512-wide output tiles, deep K.
        return 256, 512, 512, 96 * 1024 * 1024
    # v7x: 64 MiB VMEM (32 MiB scoped default); 256x256 matches its MXU.
    return 256, 256, 512, None


# ---------------------------------------------------------------------------
# Kernel A: whole forward fused in one call (small N, all layers VMEM-resident)
# ---------------------------------------------------------------------------
def fused_forward_kernel(num_layers, c_out, w_ref, a_ref, h_ref):
    # w_ref: SMEM ((num_layers + 1) * C_out, C_in) softmaxed conv weights
    # a_ref: VMEM (C_in, N, N) adjacency stack
    # h_ref: VMEM (1, N, N)   output channel `o`
    o = pl.program_id(0)
    c_in = a_ref.shape[0]
    n = a_ref.shape[1]

    def conv(widx):  # fused 1x1 GTConv for this output channel
        acc = a_ref[0] * w_ref[widx * c_out + o, 0]
        for c in range(1, c_in):
            acc = acc + a_ref[c] * w_ref[widx * c_out + o, c]
        return acc

    row = jax.lax.broadcasted_iota(jnp.int32, (n, n), 0)
    col = jax.lax.broadcasted_iota(jnp.int32, (n, n), 1)
    diag = row == col

    h = jnp.dot(conv(0), conv(1), preferred_element_type=jnp.float32)
    for li in range(1, num_layers):
        m = jnp.where(diag, 1.0, h)                   # force diagonal to 1
        deg = jnp.sum(m, axis=0, keepdims=True)       # column sums (1, N)
        inv = 1.0 / deg
        inv = jnp.where(inv == jnp.inf, 0.0, inv)     # torch: inf -> 0
        h = jnp.dot(m * inv, conv(li + 1), preferred_element_type=jnp.float32)
    h_ref[0] = h.astype(h_ref.dtype)


# ---------------------------------------------------------------------------
# Kernel B: layer 0 (first=True): H = conv1(A) @ conv2(A), conv fused into the
# matmul tiles; epilogue accumulates column degrees for the next layer's norm.
# Grid: (o, j, i, k) = (out channel, col tile, row tile, K tile).
# ---------------------------------------------------------------------------
def layer_first_kernel(w1_ref, w2_ref, a_lhs_ref, a_rhs_ref, h_ref, deg_ref,
                       acc_ref):
    o = pl.program_id(0)
    j = pl.program_id(1)
    i = pl.program_id(2)
    k = pl.program_id(3)
    nk = pl.num_programs(3)
    tm, tn = acc_ref.shape

    @pl.when(k == 0)
    def _():
        acc_ref[...] = jnp.zeros_like(acc_ref)

    @pl.when(jnp.logical_and(k == 0, i == 0))
    def _():
        deg_ref[0] = jnp.zeros((1, tn), jnp.float32)

    # fused 1x1 GTConv (softmax-weighted channel sum) on both operand slabs
    c_in = a_lhs_ref.shape[0]
    lhs = a_lhs_ref[0] * w1_ref[o, 0]
    rhs = a_rhs_ref[0] * w2_ref[o, 0]
    for c in range(1, c_in):
        lhs = lhs + a_lhs_ref[c] * w1_ref[o, c]
        rhs = rhs + a_rhs_ref[c] * w2_ref[o, c]

    acc_ref[...] += jnp.dot(lhs, rhs, preferred_element_type=jnp.float32)

    @pl.when(k == nk - 1)
    def _():
        h = acc_ref[...]
        h_ref[0] = h.astype(h_ref.dtype)
        # degree epilogue: column sums of H with the global diagonal forced to 1
        row = jax.lax.broadcasted_iota(jnp.int32, (tm, tn), 0) + i * tm
        col = jax.lax.broadcasted_iota(jnp.int32, (tm, tn), 1) + j * tn
        m = jnp.where(row == col, 1.0, h)
        deg_ref[0] = deg_ref[0] + jnp.sum(m, axis=0, keepdims=True)


# ---------------------------------------------------------------------------
# Kernel C: layers i > 0: H = norm(H_prev) @ conv(A).  The normalization is
# applied on the fly to each LHS tile (diag->1, scale columns by 1/deg_prev);
# the 1x1 conv is fused into the RHS slab; epilogue emits degrees for the next
# layer.  Grid: (o, j, i, k).
# ---------------------------------------------------------------------------
def layer_rest_kernel(w_ref, deg_in_ref, h_in_ref, a_rhs_ref, h_ref, deg_ref,
                      acc_ref):
    o = pl.program_id(0)
    j = pl.program_id(1)
    i = pl.program_id(2)
    k = pl.program_id(3)
    nk = pl.num_programs(3)
    tm, tn = acc_ref.shape
    tk = h_in_ref.shape[2]

    @pl.when(k == 0)
    def _():
        acc_ref[...] = jnp.zeros_like(acc_ref)

    @pl.when(jnp.logical_and(k == 0, i == 0))
    def _():
        deg_ref[0] = jnp.zeros((1, tn), jnp.float32)

    # fused normalization of the LHS H tile
    h_in = h_in_ref[0]                                             # (tm, tk)
    row = jax.lax.broadcasted_iota(jnp.int32, (tm, tk), 0) + i * tm
    col = jax.lax.broadcasted_iota(jnp.int32, (tm, tk), 1) + k * tk
    m = jnp.where(row == col, 1.0, h_in)
    deg = deg_in_ref[0]                                            # (1, tk)
    inv = 1.0 / deg
    inv = jnp.where(inv == jnp.inf, 0.0, inv)                      # torch: inf -> 0
    lhs = m * inv

    # fused 1x1 GTConv on the RHS A slab
    c_in = a_rhs_ref.shape[0]
    rhs = a_rhs_ref[0] * w_ref[o, 0]
    for c in range(1, c_in):
        rhs = rhs + a_rhs_ref[c] * w_ref[o, c]

    acc_ref[...] += jnp.dot(lhs, rhs, preferred_element_type=jnp.float32)

    @pl.when(k == nk - 1)
    def _():
        h = acc_ref[...]
        h_ref[0] = h.astype(h_ref.dtype)
        row2 = jax.lax.broadcasted_iota(jnp.int32, (tm, tn), 0) + i * tm
        col2 = jax.lax.broadcasted_iota(jnp.int32, (tm, tn), 1) + j * tn
        m2 = jnp.where(row2 == col2, 1.0, h)
        deg_ref[0] = deg_ref[0] + jnp.sum(m2, axis=0, keepdims=True)


# ---------------------------------------------------------------------------
# wrappers
# ---------------------------------------------------------------------------
def _small_forward(a_cf, ws, num_layers, c_out):
    c_in, n, _ = a_cf.shape
    w_stack = jnp.concatenate(ws, axis=0)  # ((num_layers + 1) * C_out, C_in)
    kernel = functools.partial(fused_forward_kernel, num_layers, c_out)
    return pl.pallas_call(
        kernel,
        out_shape=jax.ShapeDtypeStruct((c_out, n, n), jnp.float32),
        grid=(c_out,),
        in_specs=[
            pl.BlockSpec(memory_space=pltpu.MemorySpace.SMEM),
            pl.BlockSpec((c_in, n, n), lambda o: (0, 0, 0)),
        ],
        out_specs=pl.BlockSpec((1, n, n), lambda o: (o, 0, 0)),
        compiler_params=pltpu.CompilerParams(dimension_semantics=("parallel",)),
    )(w_stack, a_cf)


def _tiled_forward(a_cf, ws, num_layers, c_out):
    c_in, n, _ = a_cf.shape
    cap_m, cap_n, cap_k, vmem_limit = _tile_caps()

    n_pad = _round_up(n, 128)
    a_pad = a_cf
    if n_pad != n:
        a_pad = jnp.pad(a_cf, ((0, 0), (0, n_pad - n), (0, n_pad - n)))

    tm = _largest_tile(n_pad, cap_m)
    tn = _largest_tile(n_pad, cap_n)
    tk = _largest_tile(n_pad, cap_k)

    grid = (c_out, n_pad // tn, n_pad // tm, n_pad // tk)  # (o, j, i, k)
    cparams = pltpu.CompilerParams(
        dimension_semantics=("parallel", "parallel", "arbitrary", "arbitrary"),
        vmem_limit_bytes=vmem_limit,
    )
    out_shapes = (
        jax.ShapeDtypeStruct((c_out, n_pad, n_pad), jnp.float32),
        jax.ShapeDtypeStruct((c_out, 1, n_pad), jnp.float32),
    )
    out_specs = (
        pl.BlockSpec((1, tm, tn), lambda o, j, i, k: (o, i, j)),
        pl.BlockSpec((1, 1, tn), lambda o, j, i, k: (o, 0, j)),
    )
    scratch = [pltpu.VMEM((tm, tn), jnp.float32)]

    # layer 0 (first=True): H = conv1(A) @ conv2(A)
    h, deg = pl.pallas_call(
        layer_first_kernel,
        out_shape=out_shapes,
        grid=grid,
        in_specs=[
            pl.BlockSpec(memory_space=pltpu.MemorySpace.SMEM),               # w1
            pl.BlockSpec(memory_space=pltpu.MemorySpace.SMEM),               # w2
            pl.BlockSpec((c_in, tm, tk), lambda o, j, i, k: (0, i, k)),      # A (LHS slab)
            pl.BlockSpec((c_in, tk, tn), lambda o, j, i, k: (0, k, j)),      # A (RHS slab)
        ],
        out_specs=out_specs,
        scratch_shapes=scratch,
        compiler_params=cparams,
    )(ws[0], ws[1], a_pad, a_pad)

    # layers i > 0: H = norm(H_prev) @ conv(A)
    for li in range(1, num_layers):
        h, deg = pl.pallas_call(
            layer_rest_kernel,
            out_shape=out_shapes,
            grid=grid,
            in_specs=[
                pl.BlockSpec(memory_space=pltpu.MemorySpace.SMEM),            # w
                pl.BlockSpec((1, 1, tk), lambda o, j, i, k: (o, 0, k)),       # deg_prev
                pl.BlockSpec((1, tm, tk), lambda o, j, i, k: (o, i, k)),      # H_prev
                pl.BlockSpec((c_in, tk, tn), lambda o, j, i, k: (0, k, j)),   # A (RHS slab)
            ],
            out_specs=out_specs,
            scratch_shapes=scratch,
            compiler_params=cparams,
        )(ws[li + 1], deg, h, a_pad)

    del deg  # last layer's degree epilogue is unused
    if n_pad != n:
        h = h[:, :n, :n]
    return h


def gt_encoder_forward(a, params, num_layers, path=None):
    """A: (N, N, C_in) -> H: (C_out, N, N).  Matches GTEncoder.forward."""
    a_cf = jnp.transpose(a, (2, 0, 1)).astype(jnp.float32)   # channels-first
    c_in, n, _ = a_cf.shape
    ws = [jax.nn.softmax(w, axis=1).astype(jnp.float32)
          for layer in params for w in layer]
    c_out = ws[0].shape[0]
    assert len(ws) == num_layers + 1

    if path is None:
        # whole-forward-in-VMEM path when the working set is comfortably small
        fits = (c_in + 8) * n * n * 4 <= (8 * 1024 * 1024)
        path = "small" if fits else "tiled"

    if path == "small":
        return _small_forward(a_cf, ws, num_layers, c_out)
    return _tiled_forward(a_cf, ws, num_layers, c_out)


# ---------------------------------------------------------------------------
# Parameters (GTConv.reset_parameters uses constant 0.1; an optional
# deterministic perturbation makes channels distinct for a stronger check --
# forward semantics are weight-value independent).
# ---------------------------------------------------------------------------
def init_params(num_matrices, num_layers, num_channels, key=None):
    params = []
    for i in range(num_layers):
        n_w = 2 if i == 0 else 1
        layer = []
        for _ in range(n_w):
            w = jnp.full((num_channels, num_matrices), 0.1, jnp.float32)
            if key is not None:
                key, sub = jax.random.split(key)
                w = w + 0.05 * jax.random.normal(sub, w.shape, jnp.float32)
            layer.append(w)
        params.append(tuple(layer))
    return params


# ---------------------------------------------------------------------------
# Pure-JAX reference (HIGHEST precision so the f32 comparison is meaningful)
# ---------------------------------------------------------------------------
def ref_forward(a, params, num_layers):
    hp = jax.lax.Precision.HIGHEST
    a_cf = jnp.transpose(a, (2, 0, 1)).astype(jnp.float32)

    def conv(w):
        return jnp.einsum("oc,cij->oij", jax.nn.softmax(w, axis=1), a_cf,
                          precision=hp)

    def norm1(hc):
        n = hc.shape[0]
        eye = jnp.eye(n, dtype=hc.dtype)
        m = jnp.where(eye == 1, 1.0, hc)
        deg = jnp.sum(m, axis=0)
        deg_inv = 1.0 / deg
        deg_inv = jnp.where(deg_inv == jnp.inf, 0.0, deg_inv)
        return m * deg_inv[None, :]

    w1, w2 = params[0]
    h = jnp.einsum("cij,cjk->cik", conv(w1), conv(w2), precision=hp)
    for i in range(1, num_layers):
        hn = jax.vmap(norm1)(h)
        h = jnp.einsum("cij,cjk->cik", hn, conv(params[i][0]), precision=hp)
    return h


if __name__ == "__main__":
    key = jax.random.PRNGKey(0)
    k_a1, k_a2, k_p1, k_p2 = jax.random.split(key, 4)

    fwd = jax.jit(gt_encoder_forward, static_argnums=(2,),
                  static_argnames=("path",))

    # ---- config 1: small N (N=64) -> single fully-fused kernel path ----
    N1, M1, C1, L1 = 64, 4, 2, 2
    A1 = jax.random.uniform(k_a1, (N1, N1, M1), dtype=jnp.float32)
    p1 = init_params(M1, L1, C1, key=k_p1)
    H1 = jax.block_until_ready(fwd(A1, p1, L1))
    R1 = ref_forward(A1, p1, L1)
    assert H1.shape == (C1, N1, N1)
    assert jnp.allclose(H1, R1, rtol=1e-4, atol=1e-3), "small-path mismatch"

    # ---- config 2: N=320 (not a multiple of 128) -> padded, tiled fused path ----
    N2, M2, C2, L2 = 320, 3, 2, 3
    A2 = jax.random.uniform(k_a2, (N2, N2, M2), dtype=jnp.float32)
    p2 = init_params(M2, L2, C2, key=k_p2)
    H2 = jax.block_until_ready(fwd(A2, p2, L2, path="tiled"))
    R2 = ref_forward(A2, p2, L2)
    assert H2.shape == (C2, N2, N2)
    assert jnp.allclose(H2, R2, rtol=1e-4, atol=1e-3), "tiled-path mismatch"

    print("KERNEL_OK")
</pallas_src>

<mosaic_0001>
module attributes {stable_mosaic.version = 11 : i64} {
  func.func @fused_forward_kernel(%arg0: i32, %arg1: memref<6x4xf32, #tpu.memory_space<smem>>, %arg2: memref<4x64x64xf32, #tpu.memory_space<vmem>>, %arg3: memref<1x64x64xf32, #tpu.memory_space<vmem>>) attributes {dimension_semantics = [#tpu.dimension_semantics<parallel>], iteration_bounds = array<i64: 2>, scalar_prefetch = 0 : i64, scratch_operands = 0 : i64, tpu.core_type = #tpu.core_type<tc>, window_params = [{transform_indices = @transform_0, window_bounds = array<i64: 6, 4>}, {pipeline_mode = #tpu.pipeline_mode<synchronous>, transform_indices = @transform_1, window_bounds = array<i64: 4, 64, 64>}, {transform_indices = @transform_2, window_bounds = array<i64: 1, 64, 64>}]} {
    %0 = tpu.iota {dimensions = array<i32: 0>} : vector<64x64xi32>
    %1 = tpu.iota {dimensions = array<i32: 1>} : vector<64x64xi32>
    %2 = arith.cmpi eq, %0, %1 : vector<64x64xi32>
    %c0 = arith.constant 0 : index
    %c0_0 = arith.constant 0 : index
    %c0_1 = arith.constant 0 : index
    %3 = vector.load %arg2[%c0, %c0_0, %c0_1] : memref<4x64x64xf32, #tpu.memory_space<vmem>>, vector<1x64x64xf32>
    %4 = vector.shape_cast %3 : vector<1x64x64xf32> to vector<64x64xf32>
    %c0_i32 = arith.constant 0 : i32
    %5 = arith.addi %c0_i32, %arg0 : i32
    %6 = arith.index_cast %5 : i32 to index
    %c0_2 = arith.constant 0 : index
    %7 = memref.load %arg1[%6, %c0_2] : memref<6x4xf32, #tpu.memory_space<smem>>
    %8 = vector.broadcast %7 : f32 to vector<64x64xf32>
    %9 = arith.mulf %4, %8 : vector<64x64xf32>
    %c1 = arith.constant 1 : index
    %c0_3 = arith.constant 0 : index
    %c0_4 = arith.constant 0 : index
    %10 = vector.load %arg2[%c1, %c0_3, %c0_4] : memref<4x64x64xf32, #tpu.memory_space<vmem>>, vector<1x64x64xf32>
    %11 = vector.shape_cast %10 : vector<1x64x64xf32> to vector<64x64xf32>
    %c0_i32_5 = arith.constant 0 : i32
    %12 = arith.addi %c0_i32_5, %arg0 : i32
    %13 = arith.index_cast %12 : i32 to index
    %c1_6 = arith.constant 1 : index
    %14 = memref.load %arg1[%13, %c1_6] : memref<6x4xf32, #tpu.memory_space<smem>>
    %15 = vector.broadcast %14 : f32 to vector<64x64xf32>
    %16 = arith.mulf %11, %15 : vector<64x64xf32>
    %17 = arith.addf %9, %16 : vector<64x64xf32>
    %c2 = arith.constant 2 : index
    %c0_7 = arith.constant 0 : index
    %c0_8 = arith.constant 0 : index
    %18 = vector.load %arg2[%c2, %c0_7, %c0_8] : memref<4x64x64xf32, #tpu.memory_space<vmem>>, vector<1x64x64xf32>
    %19 = vector.shape_cast %18 : vector<1x64x64xf32> to vector<64x64xf32>
    %c0_i32_9 = arith.constant 0 : i32
    %20 = arith.addi %c0_i32_9, %arg0 : i32
    %21 = arith.index_cast %20 : i32 to index
    %c2_10 = arith.constant 2 : index
    %22 = memref.load %arg1[%21, %c2_10] : memref<6x4xf32, #tpu.memory_space<smem>>
    %23 = vector.broadcast %22 : f32 to vector<64x64xf32>
    %24 = arith.mulf %19, %23 : vector<64x64xf32>
    %25 = arith.addf %17, %24 : vector<64x64xf32>
    %c3 = arith.constant 3 : index
    %c0_11 = arith.constant 0 : index
    %c0_12 = arith.constant 0 : index
    %26 = vector.load %arg2[%c3, %c0_11, %c0_12] : memref<4x64x64xf32, #tpu.memory_space<vmem>>, vector<1x64x64xf32>
    %27 = vector.shape_cast %26 : vector<1x64x64xf32> to vector<64x64xf32>
    %c0_i32_13 = arith.constant 0 : i32
    %28 = arith.addi %c0_i32_13, %arg0 : i32
    %29 = arith.index_cast %28 : i32 to index
    %c3_14 = arith.constant 3 : index
    %30 = memref.load %arg1[%29, %c3_14] : memref<6x4xf32, #tpu.memory_space<smem>>
    %31 = vector.broadcast %30 : f32 to vector<64x64xf32>
    %32 = arith.mulf %27, %31 : vector<64x64xf32>
    %33 = arith.addf %25, %32 : vector<64x64xf32>
    %c0_15 = arith.constant 0 : index
    %c0_16 = arith.constant 0 : index
    %c0_17 = arith.constant 0 : index
    %34 = vector.load %arg2[%c0_15, %c0_16, %c0_17] : memref<4x64x64xf32, #tpu.memory_space<vmem>>, vector<1x64x64xf32>
    %35 = vector.shape_cast %34 : vector<1x64x64xf32> to vector<64x64xf32>
    %c2_i32 = arith.constant 2 : i32
    %36 = arith.addi %c2_i32, %arg0 : i32
    %37 = arith.index_cast %36 : i32 to index
    %c0_18 = arith.constant 0 : index
    %38 = memref.load %arg1[%37, %c0_18] : memref<6x4xf32, #tpu.memory_space<smem>>
    %39 = vector.broadcast %38 : f32 to vector<64x64xf32>
    %40 = arith.mulf %35, %39 : vector<64x64xf32>
    %c1_19 = arith.constant 1 : index
    %c0_20 = arith.constant 0 : index
    %c0_21 = arith.constant 0 : index
    %41 = vector.load %arg2[%c1_19, %c0_20, %c0_21] : memref<4x64x64xf32, #tpu.memory_space<vmem>>, vector<1x64x64xf32>
    %42 = vector.shape_cast %41 : vector<1x64x64xf32> to vector<64x64xf32>
    %c2_i32_22 = arith.constant 2 : i32
    %43 = arith.addi %c2_i32_22, %arg0 : i32
    %44 = arith.index_cast %43 : i32 to index
    %c1_23 = arith.constant 1 : index
    %45 = memref.load %arg1[%44, %c1_23] : memref<6x4xf32, #tpu.memory_space<smem>>
    %46 = vector.broadcast %45 : f32 to vector<64x64xf32>
    %47 = arith.mulf %42, %46 : vector<64x64xf32>
    %48 = arith.addf %40, %47 : vector<64x64xf32>
    %c2_24 = arith.constant 2 : index
    %c0_25 = arith.constant 0 : index
    %c0_26 = arith.constant 0 : index
    %49 = vector.load %arg2[%c2_24, %c0_25, %c0_26] : memref<4x64x64xf32, #tpu.memory_space<vmem>>, vector<1x64x64xf32>
    %50 = vector.shape_cast %49 : vector<1x64x64xf32> to vector<64x64xf32>
    %c2_i32_27 = arith.constant 2 : i32
    %51 = arith.addi %c2_i32_27, %arg0 : i32
    %52 = arith.index_cast %51 : i32 to index
    %c2_28 = arith.constant 2 : index
    %53 = memref.load %arg1[%52, %c2_28] : memref<6x4xf32, #tpu.memory_space<smem>>
    %54 = vector.broadcast %53 : f32 to vector<64x64xf32>
    %55 = arith.mulf %50, %54 : vector<64x64xf32>
    %56 = arith.addf %48, %55 : vector<64x64xf32>
    %c3_29 = arith.constant 3 : index
    %c0_30 = arith.constant 0 : index
    %c0_31 = arith.constant 0 : index
    %57 = vector.load %arg2[%c3_29, %c0_30, %c0_31] : memref<4x64x64xf32, #tpu.memory_space<vmem>>, vector<1x64x64xf32>
    %58 = vector.shape_cast %57 : vector<1x64x64xf32> to vector<64x64xf32>
    %c2_i32_32 = arith.constant 2 : i32
    %59 = arith.addi %c2_i32_32, %arg0 : i32
    %60 = arith.index_cast %59 : i32 to index
    %c3_33 = arith.constant 3 : index
    %61 = memref.load %arg1[%60, %c3_33] : memref<6x4xf32, #tpu.memory_space<smem>>
    %62 = vector.broadcast %61 : f32 to vector<64x64xf32>
    %63 = arith.mulf %58, %62 : vector<64x64xf32>
    %64 = arith.addf %56, %63 : vector<64x64xf32>
    %cst = arith.constant dense<0.000000e+00> : vector<64x64xf32>
    %65 = tpu.matmul %33, %64, %cst {dimension_numbers = #tpu.dot_dimension_numbers<[1], [0], [0], [1], [0, 0, 1, 1], [], []>} : vector<64x64xf32>, vector<64x64xf32>, vector<64x64xf32> -> vector<64x64xf32>
    %cst_34 = arith.constant 1.000000e+00 : f32
    %66 = vector.broadcast %cst_34 : f32 to vector<64x64xf32>
    %67 = arith.select %2, %66, %65 : vector<64x64xi1>, vector<64x64xf32>
    %cst_35 = arith.constant dense<0.000000e+00> : vector<64xf32>
    %68 = vector.multi_reduction <add>, %67, %cst_35 [0] : vector<64x64xf32> to vector<64xf32>
    %69 = vector.shape_cast %68 : vector<64xf32> to vector<1x64xf32>
    %cst_36 = arith.constant 1.000000e+00 : f32
    %70 = vector.broadcast %cst_36 : f32 to vector<1x64xf32>
    %71 = arith.divf %70, %69 : vector<1x64xf32>
    %cst_37 = arith.constant 0x7F800000 : f32
    %72 = vector.broadcast %cst_37 : f32 to vector<1x64xf32>
    %73 = arith.cmpf oeq, %71, %72 : vector<1x64xf32>
    %cst_38 = arith.constant 0.000000e+00 : f32
    %74 = vector.broadcast %cst_38 : f32 to vector<1x64xf32>
    %75 = arith.select %73, %74, %71 : vector<1x64xi1>, vector<1x64xf32>
    %76 = vector.broadcast %75 : vector<1x64xf32> to vector<64x64xf32>
    %77 = arith.mulf %67, %76 : vector<64x64xf32>
    %c0_39 = arith.constant 0 : index
    %c0_40 = arith.constant 0 : index
    %c0_41 = arith.constant 0 : index
    %78 = vector.load %arg2[%c0_39, %c0_40, %c0_41] : memref<4x64x64xf32, #tpu.memory_space<vmem>>, vector<1x64x64xf32>
    %79 = vector.shape_cast %78 : vector<1x64x64xf32> to vector<64x64xf32>
    %c4_i32 = arith.constant 4 : i32
    %80 = arith.addi %c4_i32, %arg0 : i32
    %81 = arith.index_cast %80 : i32 to index
    %c0_42 = arith.constant 0 : index
    %82 = memref.load %arg1[%81, %c0_42] : memref<6x4xf32, #tpu.memory_space<smem>>
    %83 = vector.broadcast %82 : f32 to vector<64x64xf32>
    %84 = arith.mulf %79, %83 : vector<64x64xf32>
    %c1_43 = arith.constant 1 : index
    %c0_44 = arith.constant 0 : index
    %c0_45 = arith.constant 0 : index
    %85 = vector.load %arg2[%c1_43, %c0_44, %c0_45] : memref<4x64x64xf32, #tpu.memory_space<vmem>>, vector<1x64x64xf32>
    %86 = vector.shape_cast %85 : vector<1x64x64xf32> to vector<64x64xf32>
    %c4_i32_46 = arith.constant 4 : i32
    %87 = arith.addi %c4_i32_46, %arg0 : i32
    %88 = arith.index_cast %87 : i32 to index
    %c1_47 = arith.constant 1 : index
    %89 = memref.load %arg1[%88, %c1_47] : memref<6x4xf32, #tpu.memory_space<smem>>
    %90 = vector.broadcast %89 : f32 to vector<64x64xf32>
    %91 = arith.mulf %86, %90 : vector<64x64xf32>
    %92 = arith.addf %84, %91 : vector<64x64xf32>
    %c2_48 = arith.constant 2 : index
    %c0_49 = arith.constant 0 : index
    %c0_50 = arith.constant 0 : index
    %93 = vector.load %arg2[%c2_48, %c0_49, %c0_50] : memref<4x64x64xf32, #tpu.memory_space<vmem>>, vector<1x64x64xf32>
    %94 = vector.shape_cast %93 : vector<1x64x64xf32> to vector<64x64xf32>
    %c4_i32_51 = arith.constant 4 : i32
    %95 = arith.addi %c4_i32_51, %arg0 : i32
    %96 = arith.index_cast %95 : i32 to index
    %c2_52 = arith.constant 2 : index
    %97 = memref.load %arg1[%96, %c2_52] : memref<6x4xf32, #tpu.memory_space<smem>>
    %98 = vector.broadcast %97 : f32 to vector<64x64xf32>
    %99 = arith.mulf %94, %98 : vector<64x64xf32>
    %100 = arith.addf %92, %99 : vector<64x64xf32>
    %c3_53 = arith.constant 3 : index
    %c0_54 = arith.constant 0 : index
    %c0_55 = arith.constant 0 : index
    %101 = vector.load %arg2[%c3_53, %c0_54, %c0_55] : memref<4x64x64xf32, #tpu.memory_space<vmem>>, vector<1x64x64xf32>
    %102 = vector.shape_cast %101 : vector<1x64x64xf32> to vector<64x64xf32>
    %c4_i32_56 = arith.constant 4 : i32
    %103 = arith.addi %c4_i32_56, %arg0 : i32
    %104 = arith.index_cast %103 : i32 to index
    %c3_57 = arith.constant 3 : index
    %105 = memref.load %arg1[%104, %c3_57] : memref<6x4xf32, #tpu.memory_space<smem>>
    %106 = vector.broadcast %105 : f32 to vector<64x64xf32>
    %107 = arith.mulf %102, %106 : vector<64x64xf32>
    %108 = arith.addf %100, %107 : vector<64x64xf32>
    %cst_58 = arith.constant dense<0.000000e+00> : vector<64x64xf32>
    %109 = tpu.matmul %77, %108, %cst_58 {dimension_numbers = #tpu.dot_dimension_numbers<[1], [0], [0], [1], [0, 0, 1, 1], [], []>} : vector<64x64xf32>, vector<64x64xf32>, vector<64x64xf32> -> vector<64x64xf32>
    %c0_59 = arith.constant 0 : index
    %c0_60 = arith.constant 0 : index
    %c0_61 = arith.constant 0 : index
    %110 = vector.load %arg3[%c0_59, %c0_60, %c0_61] : memref<1x64x64xf32, #tpu.memory_space<vmem>>, vector<1x64x64xf32>
    %111 = vector.shape_cast %110 : vector<1x64x64xf32> to vector<64x64xf32>
    %112 = vector.shape_cast %109 : vector<64x64xf32> to vector<1x64x64xf32>
    tpu.vector_store %arg3[%c0_59, %c0_60, %c0_61], %112 {strides = array<i32>} : memref<1x64x64xf32, #tpu.memory_space<vmem>>, vector<1x64x64xf32>,
    return
  }
  func.func @transform_0(%arg0: i32) -> (i32, i32) {
    %c0_i32 = arith.constant 0 : i32
    %c0_i32_0 = arith.constant 0 : i32
    %c0_i32_1 = arith.constant 0 : i32
    return %c0_i32, %c0_i32_0 : i32, i32
  }
  func.func @transform_1(%arg0: i32) -> (i32, i32, i32) {
    %c0_i32 = arith.constant 0 : i32
    %c0_i32_0 = arith.constant 0 : i32
    %c0_i32_1 = arith.constant 0 : i32
    %c0_i32_2 = arith.constant 0 : i32
    return %c0_i32, %c0_i32_0, %c0_i32_1 : i32, i32, i32
  }
  func.func @transform_2(%arg0: i32) -> (i32, i32, i32) {
    %c0_i32 = arith.constant 0 : i32
    %c0_i32_0 = arith.constant 0 : i32
    %c0_i32_1 = arith.constant 0 : i32
    return %arg0, %c0_i32, %c0_i32_0 : i32, i32, i32
  }
}

</mosaic_0001>

<bundles_post_ra>
// kernel: gt_encoder_forward.1
= control target key start
LH: loop header
LB: loop body
LE: loop exit
PB: predicated region body
PF: predicated region fallthrough
CT: control target
= control target key end

     0   :  { %7 = vsyncpa [#allocation4], 0  ;;  %s1463_s0 = inlined_call_operand.vmem [shape: f32[6,4], index: 0, kind: input, shape index: {}]   ;;  %s1464_s1 = inlined_call_operand.vmem [shape: f32[4,64,64], index: 1, kind: input, shape index: {}]   ;;  %s1465_s2 = inlined_call_operand.hbm [shape: f32[2,64,64], index: 2, kind: output, shape index: {}]  }
   0x1   :  { %8 = vsyncpa [#allocation3], 0 }
   0x2   :  { %10 = vsyncpa [#allocation3 + $0x1], 0  ;;  %s897_s9 = smov 0   ;;  %s899_s10 = smov 0  }
   0x3   :  { %s901_s11 = smov 0   ;;  %s903_s12 = smov 0  }
   0x4 LB: > { %s918_s13 = sadd.s32 4294967295, %s877_s12   ;;  %s667_s14 = sadd.s32 4294967294, %s877_s12   ;;  %s877_s12 = sphi %s903_s12, %s1471_s12   ;;  %s873_s11 = sphi %s901_s11, %s1470_s11   ;;  %s869_s10 = sphi %s899_s10, %s1469_s10   ;;  %s865_s9 = sphi %s897_s9, %s1468_s9  }
   0x5   : > { %s922_s15 = sadd.s32 1, %s877_s12   ;;  %s65_s16 = sadd.s32 1, %s873_s11 }
   0x6   : > { %s62_s17 = ssub.s32 %s877_s12, %s922_s15  ;;  %p75_p0 = scmp.ne.s32.totalorder %s873_s11, %s869_s10 }
   0x7   : > { %p63_p1 = scmp.eq.s32.totalorder %s62_s17, 0  ;;  %p76_p2 = scmp.eq.s32.totalorder %s918_s13, 1 }
   0x8   : > { %p81_p3 = scmp.ne.s32.totalorder %s869_s10, %s865_s9  ;;  %p82_p4 = scmp.eq.s32.totalorder %s667_s14, 1 }
   0x9   : > { %s933_s18 = scalar_select %p63_p1, %s873_s11, %s65_s16  }
   0xa   : > { %p935_p5 = por %p76_p2, %p75_p0  ;;  %p939_p6 = por %p82_p4, %p81_p3 }
   0xb   : > { %p668_p7 = scmp.ge.s32.totalorder %s877_s12, 1  ;;  %p89_p8 = scmp.lt.s32.totalorder %s877_s12, 3 }
   0xc   : > { %p756_p9 = scmp.eq.s32.totalorder %s918_s13, 0  ;;  %s101_s23 = sshll.u32 %s1463_s0, 4  ;;  %s102_s23 = int_to_ptr.vmem [resolvable:$true] %s101_s23 }
   0xd   : > { %p90_p10 = pnand %p668_p7, %p89_p8  ;;  %s879_s24 = smov [#allocation2]  }
   0xf   : > { %p748_p11 = pneg %p90_p10  ;;  %117 = sbr.rel (%p90_p10) target bundleno = 411 (0x19b), region = 28 }
  0x11   : > { %p749_p12 = pnand %p756_p9, %p748_p11 }
  0x13   : > { %751 = dma.vmem_to_smem (!%p749_p12), %s102_s23, 128, %s879_s24, [#allocation4]  }
  0x14   : > { %856 = dma.done.wait (%p756_p9), [#allocation4], 128  }
  0x15   : > { %858 = vsyncadd (%p756_p9), [#allocation4], 4294967168 }
  0x16   : > { %124 = sfence }
  0x17   : > { %s950_s25 = sshll.u32 %s918_s13, 7  ;;  %v957_v0 = vld [vmem:[%s1464_s1 + $0x38] sm:$0xff]  ;;  %v967_v2 = vld [vmem:[%s1464_s1 + $0x30] sm:$0xff]  ;;  %v972_v3 = vld [vmem:[%s1464_s1 + $0x28] sm:$0xff]  ;;  %vm327_vm0 = vcmask 523264  }
  0x18   : > { %s722_s26 = sadd.s32 256, %s950_s25  ;;  %s164_s27 = sld [smem:[#allocation2 + %s950_s25]]  ;;  %v962_v1 = vld [vmem:[%s1464_s1 + $0x78] sm:$0xff]  ;;  %v977_v4 = vld [vmem:[%s1464_s1 + $0x70] sm:$0xff]  ;;  %v982_v5 = vld [vmem:[%s1464_s1 + $0x68] sm:$0xff] }
  0x19   : > { %s260_s28 = sld [smem:[#allocation2 + %s722_s26]]  ;;  %s270_s29 = sadd.s32 1, %s722_s26  ;;  %v987_v6 = vld [vmem:[%s1464_s1 + $0x20] sm:$0xff]  ;;  %v994_v8 = vld [vmem:[%s1464_s1 + $0xb8] sm:$0xff]  ;;  %v1001_v10 = vld [vmem:[%s1464_s1 + $0xb0] sm:$0xff] }
  0x1a   : > { %s271_s30 = sld [smem:[#allocation2 + %s270_s29]]  ;;  %s289_s3 = sadd.s32 2, %s722_s26  ;;  %v1006_v11 = vld [vmem:[%s1464_s1 + $0xa8] sm:$0xff]  ;;  %v1019_v14 = vld [vmem:[%s1464_s1 + $0xf8] sm:$0xff]  ;;  %v1028_v17 = vld [vmem:[%s1464_s1 + $0xf0] sm:$0xff] }
  0x1b   : > { %s290_s4 = sld [smem:[#allocation2 + %s289_s3]]  ;;  %s308_s5 = sadd.s32 3, %s722_s26  ;;  %v1044_v23 = vld [vmem:[%s1464_s1 + $0xe8] sm:$0xff]  ;;  %v1051_v25 = vld [vmem:[%s1464_s1 + $0x60] sm:$0xff]  ;;  %v1080_v36 = vld [vmem:[%s1464_s1 + $0x18] sm:$0xff] }
  0x1c   : > { %s309_s8 = sld [smem:[#allocation2 + %s308_s5]]  ;;  %s183_s26 = sadd.s32 1, %s950_s25  ;;  %v1065_v30 = vld [vmem:[%s1464_s1 + $0xa0] sm:$0xff]  ;;  %v1085_v37 = vld [vmem:[%s1464_s1 + $0x58] sm:$0xff]  ;;  %v1114_v48 = vld [vmem:[%s1464_s1 + $0x10] sm:$0xff] }
  0x1d   : > { %s211_s6 = sadd.s32 2, %s950_s25  ;;  %v1070_v31 = vld [vmem:[%s1464_s1 + $0xe0] sm:$0xff]  ;;  %s239_s17 = sadd.s32 3, %s950_s25  ;;  %v1098_v42 = vld [vmem:[%s1464_s1 + $0x98] sm:$0xff]  ;;  %v1125_v53 = vld [vmem:[%s1464_s1 + $0x50] sm:$0xff] }
  0x1e   : > { %v989_v7 = vstv %s164_s27  ;;  %v1103_v43 = vld [vmem:[%s1464_s1 + $0xd8] sm:$0xff]  ;;  %v1130_v54 = vld [vmem:[%s1464_s1 + $0x90] sm:$0xff]  ;;  %v1144_v60 = vld [vmem:[%s1464_s1 + $0x8] sm:$0xff]  ;;  %s725_s5 = sshll.u32 %s918_s13, 6 }
  0x1f   : > { %v996_v9 = vstv %s260_s28  ;;  %v1010_v12 = vmul.f32 %v989_v7, %v987_v6  ;;  %v1014_v13 = vmul.f32 %v989_v7, %v972_v3  ;;  %s1087_s28 = sld [smem:[#allocation2 + %s183_s26]]  ;;  %v1135_v55 = vld [vmem:[%s1464_s1 + $0xd0] sm:$0xff]  ;;  %v1149_v61 = vld [vmem:[%s1464_s1 + $0x48] sm:$0xff]  ;;  %s601_s14 = scalar_lea.hbm %s1465_s2, %s725_s5 }
  0x20   : > { %v269_v15 = vmul.f32 %v996_v9, %v957_v0  ;;  %v1023_v16 = vstv %s271_s30  ;;  %v268_v18 = vmul.f32 %v996_v9, %v967_v2  ;;  %v267_v19 = vmul.f32 %v996_v9, %v972_v3  ;;  %s1105_s26 = sld [smem:[#allocation2 + %s211_s6]] }
  0x21   : > { %v280_v20 = vmul.f32 %v962_v1, %v1023_v16  ;;  %v1037_v21 = vstv %s290_s4  ;;  %v279_v22 = vmul.f32 %v977_v4, %v1023_v16  ;;  %v278_v24 = vmul.f32 %v982_v5, %v1023_v16  ;;  %s1116_s4 = sld [smem:[#allocation2 + %s239_s17]]  ;;  %s604_s17 = sshll.u32 %s601_s14, 4  ;;  %s605_s17 = int_to_ptr.hbm [resolvable:$true] %s604_s17 }
  0x22   : > { %v299_v26 = vmul.f32 %v994_v8, %v1037_v21  ;;  %v1056_v27 = vstv %s309_s8  ;;  %v298_v28 = vmul.f32 %v1001_v10, %v1037_v21  ;;  %v297_v29 = vmul.f32 %v1006_v11, %v1037_v21  ;;  %s825_s13 = sshra.s32 %s605_s17, 4  ;;  %s826_s13 = int_to_ptr.hbm [resolvable:$true] %s825_s13 }
  0x23   : > { %v288_v32 = vadd.f32 %v280_v20, %v269_v15  ;;  %v318_v33 = vmul.f32 %v1019_v14, %v1056_v27  ;;  %v287_v34 = vadd.f32 %v279_v22, %v268_v18  ;;  %v317_v35 = vmul.f32 %v1028_v17, %v1056_v27  ;;  %v1161_v20 = vld [vmem:[%s1464_s1 + $0xc8] sm:$0xff]  ;;  %s827_s21 = scalar_lea.hbm %s826_s13, 64  ;;  %p832_p2 = scmp.lt.s32.totalorder %s826_s13, %s1465_s2 }
  0x24   : > { %v286_v38 = vadd.f32 %v278_v24, %v267_v19  ;;  %v316_v39 = vmul.f32 %v1044_v23, %v1056_v27  ;;  %v266_v40 = vmul.f32 %v996_v9, %v987_v6  ;;  %v277_v41 = vmul.f32 %v1051_v25, %v1023_v16  ;;  %v1156_v19 = vld [vmem:[%s1464_s1 + $0x88] sm:$0xff]  ;;  %p828_p13 = scmp.ne.s32.totalorder %s826_s13, %s827_s21 }
  0x25   : > { %v307_v44 = vadd.f32 %v299_v26, %v288_v32  ;;  %v306_v45 = vadd.f32 %v298_v28, %v287_v34  ;;  %v296_v46 = vmul.f32 %v1065_v30, %v1037_v21  ;;  %v315_v47 = vmul.f32 %v1070_v31, %v1056_v27  ;;  %v1172_v28 = vld [vmem:[%s1464_s1] sm:$0xff] }
  0x26   : > { %v305_v49 = vadd.f32 %v297_v29, %v286_v38  ;;  %v285_v50 = vadd.f32 %v277_v41, %v266_v40  ;;  %v265_v51 = vmul.f32 %v996_v9, %v1080_v36  ;;  %v276_v52 = vmul.f32 %v1085_v37, %v1023_v16  ;;  %v1177_v29 = vld [vmem:[%s1464_s1 + $0x40] sm:$0xff]  ;;  %p829_p0 = pnand %p828_p13, %p935_p5 }
  0x27   : > { %v326_v56 = vadd.f32 %v318_v33, %v307_v44  ;;  %v325_v57 = vadd.f32 %v317_v35, %v306_v45  ;;  %v295_v58 = vmul.f32 %v1098_v42, %v1037_v21  ;;  %v314_v59 = vmul.f32 %v1103_v43, %v1056_v27  ;;  %v1186_v38 = vld [vmem:[%s1464_s1 + $0x80] sm:$0xff] }
  0x28   : > { %v324_v62 = vadd.f32 %v316_v39, %v305_v49  ;;  %v304_v63 = vadd.f32 %v296_v46, %v285_v50  ;;  %v284_v15 = vadd.f32 %v276_v52, %v265_v51  ;;  %v264_v18 = vmul.f32 %v996_v9, %v1114_v48  ;;  %v1198_v46 = vld [vmem:[%s1464_s1 + $0xc0] sm:$0xff]  ;;  %p830_p1 = pneg %p829_p0 }
  0x29   : > { %360 = vmatpush.msra.mxu0 %v326_v56  ;;  %726 = vmatpush.msra.mxu2 %v326_v56  ;;  %v275_v22 = vmul.f32 %v1125_v53, %v1023_v16  ;;  %v294_v24 = vmul.f32 %v1130_v54, %v1037_v21  ;;  %v313_v26 = vmul.f32 %v1135_v55, %v1056_v27  ;;  %v1193_v44 = vstv %s1087_s28  ;;  %s724_s28 = sadd.s32 512, %s950_s25  ;;  %s133_s25 = sand.u32 1, %s869_s10  }
  0x2a   : > { %v323_v32 = vadd.f32 %v315_v47, %v304_v63  ;;  %v303_v33 = vadd.f32 %v295_v58, %v284_v15  ;;  %v263_v34 = vmul.f32 %v996_v9, %v1144_v60  ;;  %v274_v35 = vmul.f32 %v1149_v61, %v1023_v16  ;;  %s478_s22 = sadd.s32 2, %s724_s28  ;;  %s497_s23 = sadd.s32 3, %s724_s28 }
  0x2b   : > { %361 = vmatpush.msra.mxu0 %v325_v57  ;;  %727 = vmatpush.msra.mxu2 %v325_v57  ;;  %v283_v39 = vadd.f32 %v275_v22, %v264_v18  ;;  %v293_v40 = vmul.f32 %v1156_v19, %v1037_v21  ;;  %v312_v41 = vmul.f32 %v1161_v20, %v1056_v27  ;;  %v1205_v50 = vstv %s1105_s26  ;;  %s459_s26 = sadd.s32 1, %s724_s28  ;;  %s479_s24 = sld [smem:[#allocation2 + %s478_s22]] }
  0x2c   : > { %v282_v45 = vadd.f32 %v274_v35, %v263_v34  ;;  %v262_v47 = vmul.f32 %v996_v9, %v1172_v28  ;;  %v273_v49 = vmul.f32 %v1177_v29, %v1023_v16  ;;  %v322_v51 = vadd.f32 %v314_v59, %v303_v33  ;;  %s460_s27 = sld [smem:[#allocation2 + %s459_s26]]  ;;  %s672_s29 = sshll.u32 %s133_s25, 6 }
  0x2d   : > { %362 = vmatpush.msra.mxu0 %v324_v62  ;;  %728 = vmatpush.msra.mxu2 %v324_v62  ;;  %v302_v52 = vadd.f32 %v294_v24, %v283_v39  ;;  %v292_v56 = vmul.f32 %v1186_v38, %v1037_v21  ;;  %v1210_v57 = vstv %s1116_s4  ;;  %v166_v15 = vmul.f32 %v989_v7, %v1172_v28  ;;  %s449_s4 = sld [smem:[#allocation2 + %s724_s28]]  ;;  %s135_s3 = scalar_lea.vmem [#allocation5], %s672_s29 }
  0x2e   : > { %v301_v58 = vadd.f32 %v293_v40, %v282_v45  ;;  %v281_v63 = vadd.f32 %v273_v49, %v262_v47  ;;  %v186_v9 = vmul.f32 %v1177_v29, %v1193_v44  ;;  %v311_v59 = vmul.f32 %v1198_v46, %v1056_v27  ;;  %s498_s30 = sld [smem:[#allocation2 + %s497_s23]]  ;;  %s602_s16 = sshll.u32 %s135_s3, 4  ;;  %s603_s16 = int_to_ptr.vmem [resolvable:$true] %s602_s16 }
  0x2f   : > { %363 = vmatpush.msra.mxu0 %v323_v32  ;;  %729 = vmatpush.msra.mxu2 %v323_v32  ;;  %v321_v16 = vadd.f32 %v313_v26, %v302_v52  ;;  %v214_v62 = vmul.f32 %v1186_v38, %v1205_v50  ;;  %v242_v22 = vmul.f32 %v1198_v46, %v1210_v57  ;;  %s590_s8 = scalar_lea.sflag [#allocation3], %s133_s25 }
  0x30   : > { %v300_v21 = vadd.f32 %v292_v56, %v281_v63  ;;  %v194_v18 = vadd.f32 %v186_v9, %v166_v15  ;;  %v190_v24 = vmul.f32 %v1051_v25, %v1193_v44  ;;  %v320_v33 = vadd.f32 %v312_v41, %v301_v58 }
  0x31   : > { %364 = vmatpush.msra.mxu0 %v322_v51  ;;  %730 = vmatpush.msra.mxu2 %v322_v51  ;;  %v218_v26 = vmul.f32 %v1065_v30, %v1205_v50  ;;  %v167_v27 = vmul.f32 %v989_v7, %v1144_v60  ;;  %v246_v35 = vmul.f32 %v1070_v31, %v1210_v57 }
  0x32   : > { %v222_v32 = vadd.f32 %v214_v62, %v194_v18  ;;  %v198_v34 = vadd.f32 %v190_v24, %v1010_v12  ;;  %v187_v39 = vmul.f32 %v1149_v61, %v1193_v44  ;;  %v319_v40 = vadd.f32 %v311_v59, %v300_v21 }
  0x33   : > { %365 = vmatpush.msra.mxu0 %v321_v16  ;;  %731 = vmatpush.msra.mxu2 %v321_v16  ;;  %v215_v41 = vmul.f32 %v1156_v19, %v1205_v50  ;;  %v191_v45 = vmul.f32 %v982_v5, %v1193_v44  ;;  %v219_v12 = vmul.f32 %v1006_v11, %v1205_v50 }
  0x34   : > { %v250_v47 = vadd.f32 %v242_v22, %v222_v32  ;;  %v226_v49 = vadd.f32 %v218_v26, %v198_v34  ;;  %v195_v51 = vadd.f32 %v187_v39, %v167_v27  ;;  %v243_v58 = vmul.f32 %v1161_v20, %v1210_v57 }
  0x35   : > { %366 = vmatpush.msra.mxu0 %v320_v33  ;;  %732 = vmatpush.msra.mxu2 %v320_v33  ;;  %v199_v52 = vadd.f32 %v191_v45, %v1014_v13  ;;  %v247_v63 = vmul.f32 %v1044_v23, %v1210_v57  ;;  %v168_v9 = vmul.f32 %v989_v7, %v1114_v48 }
  0x36   : > { %v254_v56 = vadd.f32 %v246_v35, %v226_v49  ;;  %v223_v15 = vadd.f32 %v215_v41, %v195_v51  ;;  %v188_v16 = vmul.f32 %v1125_v53, %v1193_v44  ;;  %v172_v59 = vmul.f32 %v989_v7, %v967_v2 }
  0x37   : > { %367 = vmatpush.msra.mxu0 %v319_v40  ;;  %733 = vmatpush.msra.mxu2 %v319_v40  ;;  %v227_v13 = vadd.f32 %v219_v12, %v199_v52  ;;  %v192_v62 = vmul.f32 %v977_v4, %v1193_v44  ;;  %v216_v18 = vmul.f32 %v1130_v54, %v1205_v50 }
  0x38   : > { %699 = vmatmul.msk.f32.vlgmr.msra.gmra.mxu0 %vm327_vm0, %v250_v47  ;;  %703 = vmatmul.msk.f32.vlgmr.msra.gmra.mxu2 %vm327_vm0, %v254_v56  ;;  %v196_v21 = vadd.f32 %v188_v16, %v168_v9  ;;  %v251_v22 = vadd.f32 %v243_v58, %v223_v15  ;;  %v220_v26 = vmul.f32 %v1001_v10, %v1205_v50 }
  0x39   : > { %v255_v24 = vadd.f32 %v247_v63, %v227_v13  ;;  %v200_v33 = vadd.f32 %v192_v62, %v172_v59  ;;  %v244_v27 = vmul.f32 %v1135_v55, %v1210_v57  ;;  %v248_v34 = vmul.f32 %v1028_v17, %v1210_v57 }
  0x3a   : > { %v224_v32 = vadd.f32 %v216_v18, %v196_v21  ;;  %v169_v35 = vmul.f32 %v989_v7, %v1080_v36  ;;  %v189_v39 = vmul.f32 %v1085_v37, %v1193_v44  ;;  %v173_v41 = vmul.f32 %v989_v7, %v957_v0 }
  0x3b   : > { %v228_v40 = vadd.f32 %v220_v26, %v200_v33  ;;  %v193_v45 = vmul.f32 %v962_v1, %v1193_v44  ;;  %v217_v47 = vmul.f32 %v1098_v42, %v1205_v50  ;;  %v221_v49 = vmul.f32 %v994_v8, %v1205_v50 }
  0x3c   : > { %v252_v51 = vadd.f32 %v244_v27, %v224_v32  ;;  %v197_v52 = vadd.f32 %v189_v39, %v169_v35  ;;  %v245_v58 = vmul.f32 %v1103_v43, %v1210_v57  ;;  %v249_v63 = vmul.f32 %v1019_v14, %v1210_v57 }
  0x3d   : > { %v256_v12 = vadd.f32 %v248_v34, %v228_v40  ;;  %v201_v56 = vadd.f32 %v193_v45, %v173_v41  ;;  %v136_v50 = vlaneseq  ;;  %v1295_v34 = vstv %s449_s4  ;;  %s831_s4 = scalar_lea.hbm %s1465_s2, 128 }
  0x3e   : > { %v225_v7 = vadd.f32 %v217_v47, %v197_v52  ;;  %v1297_v35 = vstv %s460_s27  ;;  %v458_v41 = vmul.f32 %v1295_v34, %v957_v0  ;;  %v457_v0 = vmul.f32 %v1295_v34, %v967_v2  ;;  %p833_p3 = scmp.lt.s32.totalorder %s831_s4, %s827_s21 }
  0x3f   : > { %v229_v44 = vadd.f32 %v221_v49, %v201_v56  ;;  %v137_v13 = vshrl.u32 %v136_v50, 7  ;;  %v1285_v21 = vand.u32 127, %v136_v50  ;;  %v469_v45 = vmul.f32 %v962_v1, %v1297_v35 }
  0x40   : > { %700 = vmatmul.msk.f32.gmra.mxu0 %vm327_vm0, %v251_v22  ;;  %704 = vmatmul.msk.f32.gmra.mxu2 %vm327_vm0, %v255_v24  ;;  %v253_v15 = vadd.f32 %v245_v58, %v225_v7  ;;  %p834_p4 = por %p833_p3, %p832_p2 }
  0x41   : > { %v257_v9 = vadd.f32 %v249_v63, %v229_v44  ;;  %v138_v59 = vadd.s32 8, %v137_v13  ;;  %v141_v18 = vadd.s32 32, %v137_v13  ;;  %v139_v22 = vadd.s32 16, %v137_v13 }
  0x42   : > { %v142_v24 = vadd.s32 40, %v137_v13  ;;  %v140_v33 = vadd.s32 24, %v137_v13  ;;  %vm147_vm2 = vcmp.eq.s32.totalorder %v137_v13, %v1285_v21  ;;  %v143_v26 = vadd.s32 48, %v137_v13  ;;  %p835_p7 = pnand %p834_p4, %p830_p1 }
  0x43   : > { %vm148_vm1 = vcmp.eq.s32.totalorder %v138_v59, %v1285_v21  ;;  %vm151_vm3 = vcmp.eq.s32.totalorder %v141_v18, %v1285_v21  ;;  %vm149_vm4 = vcmp.eq.s32.totalorder %v139_v22, %v1285_v21  ;;  %v477_v56 = vadd.f32 %v469_v45, %v458_v41 }
  0x44   : > { %vm152_vm5 = vcmp.eq.s32.totalorder %v142_v24, %v1285_v21  ;;  %vm150_vm6 = vcmp.eq.s32.totalorder %v140_v33, %v1285_v21  ;;  %vm153_vm7 = vcmp.eq.s32.totalorder %v143_v26, %v1285_v21  ;;  %v1324_v44 = vstv %s498_s30 }
  0x45   : > { %v468_v63 = vmul.f32 %v977_v4, %v1297_v35  ;;  %v467_v4 = vmul.f32 %v982_v5, %v1297_v35  ;;  %v453_v33 = vmul.f32 %v1295_v34, %v1114_v48  ;;  %v452_v48 = vmul.f32 %v1295_v34, %v1144_v60 }
  0x46   : > { %v451_v60 = vmul.f32 %v1295_v34, %v1172_v28 }
  0x48   : > { %701 = vmatmul.msk.f32.gmra.mxu0 %vm327_vm0, %v252_v51  ;;  %705 = vmatmul.msk.f32.gmra.mxu2 %vm327_vm0, %v256_v12  ;;  %v1310_v51 = vadd.s32 56, %v137_v13  ;;  %v1312_v12 = vstv %s479_s24  ;;  %v456_v13 = vmul.f32 %v1295_v34, %v972_v3  ;;  %v466_v3 = vmul.f32 %v1051_v25, %v1297_v35 }
  0x49   : > { %v488_v58 = vmul.f32 %v994_v8, %v1312_v12  ;;  %v507_v8 = vmul.f32 %v1019_v14, %v1324_v44  ;;  %v487_v2 = vmul.f32 %v1001_v10, %v1312_v12  ;;  %v486_v14 = vmul.f32 %v1006_v11, %v1312_v12 }
  0x4a   : > { %vm154_vm8 = vcmp.eq.s32.totalorder %v1310_v51, %v1285_v21  ;;  %v455_v10 = vmul.f32 %v1295_v34, %v987_v6  ;;  %v475_v41 = vadd.f32 %v467_v4, %v456_v13  ;;  %v485_v11 = vmul.f32 %v1065_v30, %v1312_v12 }
  0x4b   : > { %v454_v6 = vmul.f32 %v1295_v34, %v1080_v36  ;;  %v465_v30 = vmul.f32 %v1085_v37, %v1297_v35  ;;  %v484_v36 = vmul.f32 %v1098_v42, %v1312_v12  ;;  %v464_v37 = vmul.f32 %v1125_v53, %v1297_v35 }
  0x4c   : > { %v494_v24 = vadd.f32 %v486_v14, %v475_v41  ;;  %v501_v14 = vmul.f32 %v1161_v20, %v1324_v44  ;;  %v481_v34 = vmul.f32 %v1186_v38, %v1312_v12 }
  0x50   : > { %702 = vmatmul.msk.f32.gmra.mxu0 %vm327_vm0, %v253_v15  ;;  %706 = vmatmul.msk.f32.gmra.mxu2 %vm327_vm0, %v257_v9  ;;  %v496_v9 = vadd.f32 %v488_v58, %v477_v56 }
  0x52   : > { %v515_v59 = vadd.f32 %v507_v8, %v496_v9 }
  0x54   : > { %548 = vmatpush.msra.mxu1 %v515_v59  ;;  %734 = vmatpush.msra.mxu3 %v515_v59 }
  0xb5   : > { %v369_v16 = vpop.f32.mrf.mxu0 }
  0xb6   : > { %v1299_v39 = vsel %vm147_vm2, 1.0, %v369_v16  ;;  %v476_v16 = vadd.f32 %v468_v63, %v457_v0 }
  0xb7   : > { %v401_v1 = vsel %vm327_vm0, %v1299_v39, 0.0 }
  0xb8   : > { %v495_v22 = vadd.f32 %v487_v2, %v476_v16  ;;  %v472_v2 = vadd.f32 %v464_v37, %v453_v33  ;;  %v463_v16 = vmul.f32 %v1149_v61, %v1297_v35  ;;  %v462_v61 = vmul.f32 %v1177_v29, %v1297_v35 }
  0xba   : > { %v470_v51 = vadd.f32 %v462_v61, %v451_v60 }
  0xbb   : > { %v381_v62 = vpop.f32.mrf.mxu2 }
  0xbc   : > { %v1301_v40 = vsel %vm151_vm3, 1.0, %v381_v62  ;;  %v506_v62 = vmul.f32 %v1028_v17, %v1324_v44  ;;  %v505_v17 = vmul.f32 %v1044_v23, %v1324_v44  ;;  %v504_v23 = vmul.f32 %v1070_v31, %v1324_v44 }
  0xbd   : > { %v372_v57 = vpop.f32.mrf.mxu0  ;;  %v408_v7 = vsel %vm327_vm0, %v1301_v40, 0.0  ;;  %v503_v31 = vmul.f32 %v1103_v43, %v1324_v44  ;;  %v502_v43 = vmul.f32 %v1135_v55, %v1324_v44  ;;  %v489_v20 = vadd.f32 %v481_v34, %v470_v51 }
  0xbe   : > { %v1290_v27 = vsel %vm148_vm1, 1.0, %v372_v57  ;;  %v514_v25 = vadd.f32 %v506_v62, %v495_v22  ;;  %v513_v56 = vadd.f32 %v505_v17, %v494_v24  ;;  %v471_v62 = vadd.f32 %v463_v16, %v452_v48 }
  0xbf   : > { %v402_v47 = vsel %vm327_vm0, %v1290_v27, 0.0 }
  0xc0   : > { %v403_v50 = vadd.f32 %v402_v47, %v401_v1  ;;  %549 = vmatpush.msra.mxu1 %v514_v25  ;;  %735 = vmatpush.msra.mxu3 %v514_v25  ;;  %v473_v1 = vadd.f32 %v465_v30, %v454_v6 }
  0xc2   : > { %550 = vmatpush.msra.mxu1 %v513_v56  ;;  %736 = vmatpush.msra.mxu3 %v513_v56  ;;  %v492_v8 = vadd.f32 %v484_v36, %v473_v1 }
  0xc3   : > { %v384_v32 = vpop.f32.mrf.mxu2 }
  0xc4   : > { %v1350_v5 = vsel %vm152_vm5, 1.0, %v384_v32  ;;  %v474_v32 = vadd.f32 %v466_v3, %v455_v10  ;;  %v511_v13 = vadd.f32 %v503_v31, %v492_v8  ;;  %v500_v10 = vmul.f32 %v1198_v46, %v1324_v44 }
  0xc5   : > { %v375_v49 = vpop.f32.mrf.mxu0  ;;  %v410_v42 = vsel %vm327_vm0, %v1350_v5, 0.0 }
  0xc6   : > { %v1314_v52 = vsel %vm149_vm4, 1.0, %v375_v49  ;;  %v493_v58 = vadd.f32 %v485_v11, %v474_v32  ;;  %v508_v29 = vadd.f32 %v500_v10, %v489_v20 }
  0xc7   : > { %v404_v15 = vsel %vm327_vm0, %v1314_v52, 0.0 }
  0xc8   : > { %v405_v57 = vadd.f32 %v404_v15, %v403_v50  ;;  %v512_v63 = vadd.f32 %v504_v23, %v493_v58  ;;  %v483_v15 = vmul.f32 %v1130_v54, %v1312_v12  ;;  %v482_v54 = vmul.f32 %v1156_v19, %v1312_v12 }
  0xca   : > { %551 = vmatpush.msra.mxu1 %v512_v63  ;;  %737 = vmatpush.msra.mxu3 %v512_v63  ;;  %v491_v4 = vadd.f32 %v483_v15, %v472_v2  ;;  %v490_v21 = vadd.f32 %v482_v54, %v471_v62 }
  0xcb   : > { %v387_v18 = vpop.f32.mrf.mxu2 }
  0xcc   : > { %v1360_v47 = vsel %vm153_vm7, 1.0, %v387_v18  ;;  %552 = vmatpush.msra.mxu1 %v511_v13  ;;  %738 = vmatpush.msra.mxu3 %v511_v13  ;;  %v510_v28 = vadd.f32 %v502_v43, %v491_v4  ;;  %v509_v18 = vadd.f32 %v501_v14, %v490_v21 }
  0xcd   : > { %v378_v45 = vpop.f32.mrf.mxu0  ;;  %v412_v53 = vsel %vm327_vm0, %v1360_v47, 0.0 }
  0xce   : > { %v1364_v49 = vsel %vm150_vm6, 1.0, %v378_v45  ;;  %553 = vmatpush.msra.mxu1 %v510_v28  ;;  %739 = vmatpush.msra.mxu3 %v510_v28 }
  0xcf   : > { %v406_v26 = vsel %vm327_vm0, %v1364_v49, 0.0 }
  0xd0   : > { %v407_v0 = vadd.f32 %v406_v26, %v405_v57  ;;  %554 = vmatpush.msra.mxu1 %v509_v18  ;;  %740 = vmatpush.msra.mxu3 %v509_v18 }
  0xd2   : > { %v409_v9 = vadd.f32 %v408_v7, %v407_v0  ;;  %555 = vmatpush.msra.mxu1 %v508_v29  ;;  %741 = vmatpush.msra.mxu3 %v508_v29 }
  0xd3   : > { %v390_v50 = vpop.f32.mrf.mxu2 }
  0xd4   : > { %v411_v7 = vadd.f32 %v410_v42, %v409_v9  ;;  %v400_v55 = vsel %vm154_vm8, 1.0, %v390_v50 }
  0xd5   : > { %v414_v59 = vsel %vm327_vm0, %v400_v55, 0.0 }
  0xd6   : > { %v413_v19 = vadd.f32 %v412_v53, %v411_v7 }
  0xd8   : > { %v415_v57 = vadd.f32 %v414_v59, %v413_v19 }
  0xda   : > { %v416_v22 = vrot.slane %v415_v57, 4 }
  0xdc   : > { %v417_v35 = vadd.f32 %v416_v22, %v415_v57 }
  0xde   : > { %v418_v41 = vrot.slane %v417_v35, 2 }
  0xe0   : > { %v419_v3 = vadd.f32 %v418_v41, %v417_v35 }
  0xe2   : > { %v420_v38 = vrot.slane %v419_v3, 1 }
  0xe4   : > { %v421_v12 = vadd.f32 %v420_v38, %v419_v3 }
  0xe6   : > { %794 = vrcp.f32 %v421_v12  ;;  %v433_v44 = vand.u32 2147483648, %v421_v12  ;;  %v431_v45 = vand.u32 2147483647, %v421_v12  ;;  %vm427_vm10 = vweird.f32 %v421_v12 }
  0xe8   : > { %v434_v24 = vor.u32 1.1754944e-38, %v433_v44  ;;  %vm432_vm12 = vcmp.eq.f32.partialorder %v431_v45, 8.507059e+37 }
  0xec   : > { %v795_v17 = vpop.eup %794 }
  0xed   : > { %v423_v11 = vmul.f32 %v795_v17, %v421_v12  ;;  %vm428_vm9 = vweird.f32 %v795_v17 }
  0xee   : > { %vm429_vm11 = vmor %vm427_vm10, %vm428_vm9 }
  0xef   : > { %v424_v46 = vsub.f32 1.0, %v423_v11 }
  0xf1   : > { %v425_v6 = vmul.f32 %v795_v17, %v424_v46 }
  0xf3   : > { %v426_v25 = vadd.f32 %v795_v17, %v425_v6 }
  0xf5   : > { %v430_v32 = vsel %vm429_vm11, %v795_v17, %v426_v25 }
  0xf6   : > { %v435_v23 = vsel %vm432_vm12, %v434_v24, %v430_v32 }
  0xf7   : > { %vm437_vm13 = vcmp.eq.f32.partialorder %v435_v23, inf }
  0xf8   : > { %v438_v30 = vsel %vm437_vm13, 0.0, %v435_v23 }
  0xf9   : > { %v439_v36 = vmul.f32 %v438_v30, %v1299_v39  ;;  %v443_v26 = vmul.f32 %v438_v30, %v1301_v40  ;;  %v440_v56 = vmul.f32 %v438_v30, %v1290_v27  ;;  %v444_v58 = vmul.f32 %v438_v30, %v1350_v5 }
  0xfa   : > { %v441_v33 = vmul.f32 %v438_v30, %v1314_v52  ;;  %v445_v0 = vmul.f32 %v438_v30, %v1360_v47  ;;  %v446_v39 = vmul.f32 %v438_v30, %v400_v55  ;;  %v442_v40 = vmul.f32 %v438_v30, %v1364_v49 }
  0xfb   : > { %708 = vmatmul.msk.f32.vlgmr.msra.gmra.mxu1 %vm327_vm0, %v439_v36  ;;  %712 = vmatmul.msk.f32.vlgmr.msra.gmra.mxu3 %vm327_vm0, %v443_v26 }
 0x103   : > { %709 = vmatmul.msk.f32.gmra.mxu1 %vm327_vm0, %v440_v56  ;;  %713 = vmatmul.msk.f32.gmra.mxu3 %vm327_vm0, %v444_v58 }
 0x10b   : > { %710 = vmatmul.msk.f32.gmra.mxu1 %vm327_vm0, %v441_v33  ;;  %714 = vmatmul.msk.f32.gmra.mxu3 %vm327_vm0, %v445_v0 }
 0x113   : > { %711 = vmatmul.msk.f32.gmra.mxu1 %vm327_vm0, %v442_v40  ;;  %715 = vmatmul.msk.f32.gmra.mxu3 %vm327_vm0, %v446_v39 }
 0x178   : > { %v557_v27 = vpop.f32.mrf.mxu1 }
 0x179   : > { %581 = vst.msk [vmem:[%s135_s3] sm:$0xff] %vm327_vm0, %v557_v27 }
 0x17e   : > { %v569_v52 = vpop.f32.mrf.mxu3 }
 0x17f   : > { %585 = vst.msk [vmem:[%s135_s3 + $0x20] sm:$0xff] %vm327_vm0, %v569_v52 }
 0x180   : > { %v560_v5 = vpop.f32.mrf.mxu1 }
 0x181   : > { %582 = vst.msk [vmem:[%s135_s3 + $0x8] sm:$0xff] %vm327_vm0, %v560_v5 }
 0x186   : > { %v572_v47 = vpop.f32.mrf.mxu3 }
 0x187   : > { %586 = vst.msk [vmem:[%s135_s3 + $0x28] sm:$0xff] %vm327_vm0, %v572_v47 }
 0x188   : > { %v563_v49 = vpop.f32.mrf.mxu1 }
 0x189   : > { %583 = vst.msk [vmem:[%s135_s3 + $0x10] sm:$0xff] %vm327_vm0, %v563_v49 }
 0x18e   : > { %v575_v1 = vpop.f32.mrf.mxu3 }
 0x18f   : > { %587 = vst.msk [vmem:[%s135_s3 + $0x30] sm:$0xff] %vm327_vm0, %v575_v1 }
 0x190   : > { %v566_v31 = vpop.f32.mrf.mxu1 }
 0x191   : > { %584 = vst.msk [vmem:[%s135_s3 + $0x18] sm:$0xff] %vm327_vm0, %v566_v31 }
 0x196   : > { %v578_v37 = vpop.f32.mrf.mxu3 }
 0x197   : > { %588 = vst.msk [vmem:[%s135_s3 + $0x38] sm:$0xff] %vm327_vm0, %v578_v37 }
 0x198   : > { %838 = shalt.err (!%p835_p7)
}
 0x199   : > { %s880_s23 = smov 128   ;;  %s881_s24 = smov 8  }
 0x19a   : > { %746 = dma.vmem_to_hbm [thread:$0]  (%p935_p5), %s603_s16, 1024, %s605_s17, %s590_s8, %s880_s23, %s880_s23, %s881_s24  }
 0x19b PF: > { %p758_p8 = scmp.ge.s32.totalorder %s877_s12, 2  ;;  %s619_s30 = sand.u32 1, %s865_s9  }
 0x19c   : > { %s620_s25 = scalar_lea.sflag [#allocation3], %s619_s30 }
 0x19d   : > { %p753_p9 = pnand %p758_p8, %p939_p6 }
 0x19f   : > { %p754_p10 = pneg %p753_p9 }
 0x1a1   : > { %860 = dma.done.wait (%p754_p10), %s620_s25, 1024  }
 0x1a2   : > { %862 = vsyncadd (%p754_p10), %s620_s25, 4294966272  ;;  %p13_p11 = scmp.ge.s32.totalorder %s922_s15, 4   ;;  %s1468_s9 = smov %s869_s10 }
 0x1a3   : > { %s1469_s10 = smov %s873_s11  ;;  %s1470_s11 = smov %s933_s18 }
 0x1a4   : > { %s1471_s12 = smov %s922_s15  ;;  %15 = sbr.rel (!%p13_p11) target bundleno = 4 (0x4), region = 68 }
 0x1a9   :  { %626 = vsyncpa [#allocation3], 1 }
 0x1aa   :  { %628 = vsyncpa [#allocation3 + $0x1], 1 }
 0x1ab   :  { %629 = vsyncpa [#allocation4], 1 }
 0x1ac   :  { %631 = vsyncpa [#allocation4 + $0x1], 1 }

</bundles_post_ra>
